<compile_context>
chip_gen: v7x
topology: tpu7x:2x2x1
jax: 0.10.0
libtpu: 0.0.40
codegen_flags: <defaults>
</compile_context>

<pallas_src>
import jax
import jax.numpy as jnp
from jax.experimental import pallas as pl
from jax.experimental.pallas import tpu as pltpu


N_TRACK = 10
N_WAYPOINTS = 3
IN_DIM = N_TRACK * 4       # 40 = cat(track_left, track_right, dim=-1) flattened
H1 = 128
H2 = 64
OUT_DIM = N_WAYPOINTS * 2  # 6


def _round_up(x, m):
    return ((x + m - 1) // m) * m


def mlp_planner_kernel(x_ref, w1_ref, b1_ref, w2_ref, b2_ref, w3_ref, b3_ref,
                       o_ref):
    # x_ref: (TB, 40) tile; o_ref: (TB, 6) f32 tile. Weights/biases are VMEM
    # resident (constant index maps). Biases are always f32; bias add / ReLU
    # happen on the f32 accumulators (no bf16 VPU dependence on v5e).
    x = x_ref[...]

    h1 = jnp.dot(x, w1_ref[...], preferred_element_type=jnp.float32) + b1_ref[...]
    h1 = jnp.maximum(h1, 0.0)

    h2 = (jnp.dot(h1.astype(w2_ref.dtype), w2_ref[...],
                  preferred_element_type=jnp.float32) + b2_ref[...])
    h2 = jnp.maximum(h2, 0.0)

    h3 = (jnp.dot(h2.astype(w3_ref.dtype), w3_ref[...],
                  preferred_element_type=jnp.float32) + b3_ref[...])
    o_ref[...] = h3.astype(o_ref.dtype)


def mlp_planner_forward(track_left, track_right, params, *,
                        tb=4096, min_total_steps=4,
                        operand_dtype=jnp.float32):
    """track_left, track_right: (B, n_track, 2) f32 -> (B, n_waypoints, 2) f32."""
    w1, b1, w2, b2, w3, b3 = params
    b = track_left.shape[0]

    # Exact PyTorch semantics: cat along the last dim then flatten ->
    # (B, 40) with per-point (l_x, l_y, r_x, r_y) interleave.  Produced once
    # here so the kernel runs a single K=40 fc1 dot with the original weight.
    x = jnp.concatenate([track_left, track_right], axis=-1).reshape(b, IN_DIM)

    # Optional reduced-precision MXU operands (accumulation stays f32).
    x = x.astype(operand_dtype)
    w1 = w1.astype(operand_dtype)
    w2 = w2.astype(operand_dtype)
    w3 = w3.astype(operand_dtype)
    b1 = b1.astype(jnp.float32)
    b2 = b2.astype(jnp.float32)
    b3 = b3.astype(jnp.float32)

    # Batch tile: multiple of 8 sublanes, capped both by `tb` and so that the
    # grid has at least `min_total_steps` steps (megacore sharding on v7x).
    tb_eff = min(tb, _round_up(pl.cdiv(b, min_total_steps), 8))
    tb_eff = max(tb_eff, 8)
    grid = (pl.cdiv(b, tb_eff),)   # no padding: boundary block handled by Pallas

    def resident(shape):
        # Constant index map -> block never changes -> stays in VMEM across steps.
        return pl.BlockSpec(shape, lambda i: (0, 0))

    op_bytes = jnp.dtype(operand_dtype).itemsize
    weight_bytes = (op_bytes * (IN_DIM * H1 + H1 * H2 + H2 * OUT_DIM)
                    + 4 * (H1 + H2 + OUT_DIM))
    cost = pl.CostEstimate(
        flops=2 * b * (IN_DIM * H1 + H1 * H2 + H2 * OUT_DIM),
        bytes_accessed=op_bytes * b * IN_DIM + 4 * b * OUT_DIM + weight_bytes,
        transcendentals=0,
    )

    out = pl.pallas_call(
        mlp_planner_kernel,
        out_shape=jax.ShapeDtypeStruct((b, OUT_DIM), jnp.float32),
        grid=grid,
        in_specs=[
            pl.BlockSpec((tb_eff, IN_DIM), lambda i: (i, 0)),   # x tile
            resident((IN_DIM, H1)),                             # w1
            resident((1, H1)),                                  # b1
            resident((H1, H2)),                                 # w2
            resident((1, H2)),                                  # b2
            resident((H2, OUT_DIM)),                            # w3
            resident((1, OUT_DIM)),                             # b3
        ],
        out_specs=pl.BlockSpec((tb_eff, OUT_DIM), lambda i: (i, 0)),
        compiler_params=pltpu.CompilerParams(
            dimension_semantics=("parallel",),
            # 48 MiB: above v5e's 16 MiB default scoped limit (needed for
            # TB > ~2048 in f32), comfortably under v7x's 64 MiB physical VMEM.
            vmem_limit_bytes=48 * 1024 * 1024,
        ),
        cost_estimate=cost,
    )(x, w1, b1, w2, b2, w3, b3)

    return out.reshape(b, N_WAYPOINTS, 2)


def init_params(key):
    """Deterministic synthetic parameters, stored as (in, out); biases (1, out)."""
    k1, k2, k3, k4, k5, k6 = jax.random.split(key, 6)
    w1 = jax.random.normal(k1, (IN_DIM, H1), jnp.float32) * 0.05
    b1 = jax.random.normal(k2, (1, H1), jnp.float32) * 0.01
    w2 = jax.random.normal(k3, (H1, H2), jnp.float32) * 0.05
    b2 = jax.random.normal(k4, (1, H2), jnp.float32) * 0.01
    w3 = jax.random.normal(k5, (H2, OUT_DIM), jnp.float32) * 0.05
    b3 = jax.random.normal(k6, (1, OUT_DIM), jnp.float32) * 0.01
    return (w1, b1, w2, b2, w3, b3)


def reference_forward(track_left, track_right, params):
    """Plain-JAX reference matching the PyTorch forward exactly."""
    w1, b1, w2, b2, w3, b3 = params
    b = track_left.shape[0]
    x = jnp.concatenate([track_left, track_right], axis=-1).reshape(b, -1)
    x = jax.nn.relu(x @ w1 + b1)
    x = jax.nn.relu(x @ w2 + b2)
    x = x @ w3 + b3
    return x.reshape(b, N_WAYPOINTS, 2)


if __name__ == "__main__":
    key = jax.random.PRNGKey(0)
    kp, kl, kr = jax.random.split(key, 3)

    params = init_params(kp)

    B = 2   # small, deliberately not a multiple of the sublane tile
    track_left = jax.random.normal(kl, (B, N_TRACK, 2), jnp.float32)
    track_right = jax.random.normal(kr, (B, N_TRACK, 2), jnp.float32)

    ref = reference_forward(track_left, track_right, params)

    # f32 operand path (default): strict check.
    out = mlp_planner_forward(track_left, track_right, params)
    out = jax.block_until_ready(out)
    assert out.shape == (B, N_WAYPOINTS, 2), out.shape
    assert jnp.allclose(out, ref, atol=1e-5, rtol=1e-5), "f32 mismatch vs reference"

    # bf16 operand path (v6e/v7x HBM/VMEM saver): loose check, f32 accumulation.
    out_bf16 = mlp_planner_forward(track_left, track_right, params,
                                   operand_dtype=jnp.bfloat16)
    out_bf16 = jax.block_until_ready(out_bf16)
    assert jnp.allclose(out_bf16, ref, atol=3e-2, rtol=3e-2), "bf16 mismatch vs reference"

    print("KERNEL_OK")
</pallas_src>

<mosaic_0001>
module attributes {stable_mosaic.version = 11 : i64} {
  func.func @mlp_planner_kernel(%arg0: i32, %arg1: memref<8x40xf32, #tpu.memory_space<vmem>>, %arg2: memref<40x128xf32, #tpu.memory_space<vmem>>, %arg3: memref<1x128xf32, #tpu.memory_space<vmem>>, %arg4: memref<128x64xf32, #tpu.memory_space<vmem>>, %arg5: memref<1x64xf32, #tpu.memory_space<vmem>>, %arg6: memref<64x6xf32, #tpu.memory_space<vmem>>, %arg7: memref<1x6xf32, #tpu.memory_space<vmem>>, %arg8: memref<8x6xf32, #tpu.memory_space<vmem>>) attributes {dimension_semantics = [#tpu.dimension_semantics<parallel>], iteration_bounds = array<i64: 1>, scalar_prefetch = 0 : i64, scratch_operands = 0 : i64, tpu.core_type = #tpu.core_type<tc>, window_params = [{transform_indices = @transform_0, window_bounds = array<i64: 8, 40>}, {pipeline_mode = #tpu.pipeline_mode<synchronous>, transform_indices = @transform_1, window_bounds = array<i64: 40, 128>}, {pipeline_mode = #tpu.pipeline_mode<synchronous>, transform_indices = @transform_2, window_bounds = array<i64: 1, 128>}, {pipeline_mode = #tpu.pipeline_mode<synchronous>, transform_indices = @transform_3, window_bounds = array<i64: 128, 64>}, {pipeline_mode = #tpu.pipeline_mode<synchronous>, transform_indices = @transform_4, window_bounds = array<i64: 1, 64>}, {pipeline_mode = #tpu.pipeline_mode<synchronous>, transform_indices = @transform_5, window_bounds = array<i64: 64, 6>}, {pipeline_mode = #tpu.pipeline_mode<synchronous>, transform_indices = @transform_6, window_bounds = array<i64: 1, 6>}, {transform_indices = @transform_7, window_bounds = array<i64: 8, 6>}]} {
    %c0 = arith.constant 0 : index
    %c0_0 = arith.constant 0 : index
    %0 = vector.load %arg1[%c0, %c0_0] : memref<8x40xf32, #tpu.memory_space<vmem>>, vector<8x40xf32>
    %c0_1 = arith.constant 0 : index
    %c0_2 = arith.constant 0 : index
    %1 = vector.load %arg2[%c0_1, %c0_2] : memref<40x128xf32, #tpu.memory_space<vmem>>, vector<40x128xf32>
    %cst = arith.constant dense<0.000000e+00> : vector<8x128xf32>
    %2 = tpu.matmul %0, %1, %cst {dimension_numbers = #tpu.dot_dimension_numbers<[1], [0], [0], [1], [0, 0, 1, 1], [], []>} : vector<8x40xf32>, vector<40x128xf32>, vector<8x128xf32> -> vector<8x128xf32>
    %c0_3 = arith.constant 0 : index
    %c0_4 = arith.constant 0 : index
    %3 = vector.load %arg3[%c0_3, %c0_4] : memref<1x128xf32, #tpu.memory_space<vmem>>, vector<1x128xf32>
    %4 = vector.broadcast %3 : vector<1x128xf32> to vector<8x128xf32>
    %5 = arith.addf %2, %4 : vector<8x128xf32>
    %cst_5 = arith.constant 0.000000e+00 : f32
    %6 = vector.broadcast %cst_5 : f32 to vector<8x128xf32>
    %7 = arith.maximumf %5, %6 : vector<8x128xf32>
    %c0_6 = arith.constant 0 : index
    %c0_7 = arith.constant 0 : index
    %8 = vector.load %arg4[%c0_6, %c0_7] : memref<128x64xf32, #tpu.memory_space<vmem>>, vector<128x64xf32>
    %cst_8 = arith.constant dense<0.000000e+00> : vector<8x64xf32>
    %9 = tpu.matmul %7, %8, %cst_8 {dimension_numbers = #tpu.dot_dimension_numbers<[1], [0], [0], [1], [0, 0, 1, 1], [], []>} : vector<8x128xf32>, vector<128x64xf32>, vector<8x64xf32> -> vector<8x64xf32>
    %c0_9 = arith.constant 0 : index
    %c0_10 = arith.constant 0 : index
    %10 = vector.load %arg5[%c0_9, %c0_10] : memref<1x64xf32, #tpu.memory_space<vmem>>, vector<1x64xf32>
    %11 = vector.broadcast %10 : vector<1x64xf32> to vector<8x64xf32>
    %12 = arith.addf %9, %11 : vector<8x64xf32>
    %cst_11 = arith.constant 0.000000e+00 : f32
    %13 = vector.broadcast %cst_11 : f32 to vector<8x64xf32>
    %14 = arith.maximumf %12, %13 : vector<8x64xf32>
    %c0_12 = arith.constant 0 : index
    %c0_13 = arith.constant 0 : index
    %15 = vector.load %arg6[%c0_12, %c0_13] : memref<64x6xf32, #tpu.memory_space<vmem>>, vector<64x6xf32>
    %cst_14 = arith.constant dense<0.000000e+00> : vector<8x6xf32>
    %16 = tpu.matmul %14, %15, %cst_14 {dimension_numbers = #tpu.dot_dimension_numbers<[1], [0], [0], [1], [0, 0, 1, 1], [], []>} : vector<8x64xf32>, vector<64x6xf32>, vector<8x6xf32> -> vector<8x6xf32>
    %c0_15 = arith.constant 0 : index
    %c0_16 = arith.constant 0 : index
    %17 = vector.load %arg7[%c0_15, %c0_16] : memref<1x6xf32, #tpu.memory_space<vmem>>, vector<1x6xf32>
    %18 = vector.broadcast %17 : vector<1x6xf32> to vector<8x6xf32>
    %19 = arith.addf %16, %18 : vector<8x6xf32>
    %c0_17 = arith.constant 0 : index
    %c0_18 = arith.constant 0 : index
    %20 = vector.load %arg8[%c0_17, %c0_18] : memref<8x6xf32, #tpu.memory_space<vmem>>, vector<8x6xf32>
    tpu.vector_store %arg8[%c0_17, %c0_18], %19 {strides = array<i32>} : memref<8x6xf32, #tpu.memory_space<vmem>>, vector<8x6xf32>,
    return
  }
  func.func @transform_0(%arg0: i32) -> (i32, i32) {
    %c0_i32 = arith.constant 0 : i32
    %c0_i32_0 = arith.constant 0 : i32
    return %arg0, %c0_i32 : i32, i32
  }
  func.func @transform_1(%arg0: i32) -> (i32, i32) {
    %c0_i32 = arith.constant 0 : i32
    %c0_i32_0 = arith.constant 0 : i32
    %c0_i32_1 = arith.constant 0 : i32
    return %c0_i32, %c0_i32_0 : i32, i32
  }
  func.func @transform_2(%arg0: i32) -> (i32, i32) {
    %c0_i32 = arith.constant 0 : i32
    %c0_i32_0 = arith.constant 0 : i32
    %c0_i32_1 = arith.constant 0 : i32
    return %c0_i32, %c0_i32_0 : i32, i32
  }
  func.func @transform_3(%arg0: i32) -> (i32, i32) {
    %c0_i32 = arith.constant 0 : i32
    %c0_i32_0 = arith.constant 0 : i32
    %c0_i32_1 = arith.constant 0 : i32
    return %c0_i32, %c0_i32_0 : i32, i32
  }
  func.func @transform_4(%arg0: i32) -> (i32, i32) {
    %c0_i32 = arith.constant 0 : i32
    %c0_i32_0 = arith.constant 0 : i32
    %c0_i32_1 = arith.constant 0 : i32
    return %c0_i32, %c0_i32_0 : i32, i32
  }
  func.func @transform_5(%arg0: i32) -> (i32, i32) {
    %c0_i32 = arith.constant 0 : i32
    %c0_i32_0 = arith.constant 0 : i32
    %c0_i32_1 = arith.constant 0 : i32
    return %c0_i32, %c0_i32_0 : i32, i32
  }
  func.func @transform_6(%arg0: i32) -> (i32, i32) {
    %c0_i32 = arith.constant 0 : i32
    %c0_i32_0 = arith.constant 0 : i32
    %c0_i32_1 = arith.constant 0 : i32
    return %c0_i32, %c0_i32_0 : i32, i32
  }
  func.func @transform_7(%arg0: i32) -> (i32, i32) {
    %c0_i32 = arith.constant 0 : i32
    %c0_i32_0 = arith.constant 0 : i32
    return %arg0, %c0_i32 : i32, i32
  }
}

</mosaic_0001>

<bundles_post_ra>
// kernel: tpu_custom_call.1
= control target key start
LH: loop header
LB: loop body
LE: loop exit
PB: predicated region body
PF: predicated region fallthrough
CT: control target
= control target key end

     0   :  { %12 = vsyncpa [#allocation3], 0  ;;  %v492_v2 = vmov 0.0|0.0   ;;  %vm493_vm0 = vmmov 0   ;;  %v494_v6 = vmov 0.0   ;;  %vm40_vm1 = vcmask 326656   ;;  %s666_s0 = inlined_call_operand.vmem [shape: f32[2,40], index: 0, kind: input, shape index: {}]   ;;  %s667_s1 = inlined_call_operand.vmem [shape: f32[40,128], index: 1, kind: input, shape index: {}]   ;;  %s668_s2 = inlined_call_operand.vmem [shape: f32[1,128], index: 2, kind: input, shape index: {}]   ;;  %s669_s3 = inlined_call_operand.vmem [shape: f32[128,64], index: 3, kind: input, shape index: {}]   ;;  %s670_s4 = inlined_call_operand.vmem [shape: f32[1,64], index: 4, kind: input, shape index: {}]   ;;  %s671_s5 = inlined_call_operand.vmem [shape: f32[64,6], index: 5, kind: input, shape index: {}]   ;;  %s672_s6 = inlined_call_operand.vmem [shape: f32[1,6], index: 6, kind: input, shape index: {}]   ;;  %s673_s7 = inlined_call_operand.hbm [shape: f32[2,6], index: 7, kind: output, shape index: {}]  }
   0x1   :  { %v28_v0 = vld [vmem:[%s667_s1] sm:$0xff]  ;;  %v29_v1 = vld [vmem:[%s667_s1 + $0x8] sm:$0xff]  ;;  %420 = vmatprep.subr.bf16.mxu0 %v492_v2  ;;  %v30_v4 = vld [vmem:[%s667_s1 + $0x10] sm:$0xff]  ;;  %426 = vmatprep.subr.bf16.mxu1 %v492_v2  ;;  %vm224_vm2 = vcmask 523264   ;;  %vm298_vm3 = vcmask 48128  }
   0x2   :  { %v421_v3 = vpack.c.bf16 %v29_v1, %v28_v0  ;;  %v31_v5 = vld [vmem:[%s667_s1 + $0x18] sm:$0xff]  ;;  %363 = vmatprep.mubr.msk.f32.mxu0 %vm493_vm0, %v494_v6  ;;  %v115_v7 = vld [vmem:[%s669_s3] sm:$0xff]  ;;  %v116_v8 = vld [vmem:[%s669_s3 + $0x8] sm:$0xff]  ;;  %398 = vmatprep.mubr.msk.f32.mxu1 %vm493_vm0, %v494_v6 }
   0x3   :  { %v424_v9 = vpack.c.bf16 %v31_v5, %v30_v4  ;;  %v427_v10 = vpack.c.bf16 %v116_v8, %v115_v7  ;;  %v117_v11 = vld [vmem:[%s669_s3 + $0x10] sm:$0xff]  ;;  %v118_v12 = vld [vmem:[%s669_s3 + $0x18] sm:$0xff]  ;;  %v119_v14 = vld [vmem:[%s669_s3 + $0x20] sm:$0xff] }
   0x4   :  { %422 = vmatpush3.bf16.msra.mxu0 %v421_v3  ;;  %v430_v13 = vpack.c.bf16 %v118_v12, %v117_v11  ;;  %v120_v15 = vld [vmem:[%s669_s3 + $0x28] sm:$0xff]  ;;  %v32_v16 = vld [vmem:[%s667_s1 + $0x20] sm:$0xff]  ;;  %v121_v19 = vld [vmem:[%s669_s3 + $0x30] sm:$0xff] }
   0x5   :  { %423 = vmatprep.subr.bf16.mxu0 %v492_v2  ;;  %428 = vmatpush3.bf16.msra.mxu1 %v427_v10  ;;  %v27_v17 = vld [vmem:[%s666_s0] sm:$0xff]  ;;  %v433_v18 = vpack.c.bf16 %v120_v15, %v119_v14  ;;  %v122_v20 = vld [vmem:[%s669_s3 + $0x38] sm:$0xff]  ;;  %v124_v23 = vld [vmem:[%s669_s3 + $0x48] sm:$0xff] }
   0x6   :  { %429 = vmatprep.subr.bf16.mxu1 %v492_v2  ;;  %v436_v21 = vpack.c.bf16 %v122_v20, %v121_v19  ;;  %v123_v22 = vld [vmem:[%s669_s3 + $0x40] sm:$0xff]  ;;  %v125_v25 = vld [vmem:[%s669_s3 + $0x50] sm:$0xff]  ;;  %v126_v26 = vld [vmem:[%s669_s3 + $0x58] sm:$0xff] }
   0x7   :  { %v439_v24 = vpack.c.bf16 %v124_v23, %v123_v22  ;;  %v442_v27 = vpack.c.bf16 %v126_v26, %v125_v25  ;;  %v127_v28 = vld [vmem:[%s669_s3 + $0x60] sm:$0xff]  ;;  %v128_v29 = vld [vmem:[%s669_s3 + $0x68] sm:$0xff]  ;;  %v129_v31 = vld [vmem:[%s669_s3 + $0x70] sm:$0xff] }
   0x8   :  { %425 = vmatpush3.bf16.msra.mxu0 %v424_v9  ;;  %v445_v30 = vpack.c.bf16 %v128_v29, %v127_v28  ;;  %v130_v32 = vld [vmem:[%s669_s3 + $0x78] sm:$0xff]  ;;  %v209_v34 = vld [vmem:[%s671_s5] sm:$0xff]  ;;  %v210_v35 = vld [vmem:[%s671_s5 + $0x8] sm:$0xff] }
   0x9   :  { %361 = vmatprep.subr.mxu0 %v494_v6  ;;  %431 = vmatpush3.bf16.msra.mxu1 %v430_v13  ;;  %v448_v33 = vpack.c.bf16 %v130_v32, %v129_v31  ;;  %v211_v36 = vld [vmem:[%s671_s5 + $0x10] sm:$0xff]  ;;  %v451_v37 = vpack.c.bf16 %v210_v35, %v209_v34  ;;  %v212_v38 = vld [vmem:[%s671_s5 + $0x18] sm:$0xff]  ;;  %v213_v40 = vld [vmem:[%s671_s5 + $0x20] sm:$0xff] }
   0xa   :  { %432 = vmatprep.subr.bf16.mxu1 %v492_v2  ;;  %v454_v39 = vpack.c.bf16 %v212_v38, %v211_v36  ;;  %v214_v41 = vld [vmem:[%s671_s5 + $0x28] sm:$0xff]  ;;  %v316_v43 = vld [vmem:[%s668_s2] ss:$0 sm:$0xff]  ;;  %v215_v48 = vld [vmem:[%s671_s5 + $0x30] sm:$0xff] }
   0xb   :  { %v457_v42 = vpack.c.bf16 %v214_v41, %v213_v40  ;;  %v216_v49 = vld [vmem:[%s671_s5 + $0x38] sm:$0xff]  ;;  %v318_v51 = vld [vmem:[%s670_s4] ss:$0 sm:$0xff] }
   0xc   :  { %362 = vmatpush3.msra.mxu0 %v32_v16  ;;  %v460_v50 = vpack.c.bf16 %v216_v49, %v215_v48  ;;  %v319_v56 = vld [vmem:[%s672_s6] ss:$0 sm:$0xff] }
   0xd   :  { %364 = vmatmul.mubr.msk.f32.vlgmr.msra.gmra.mrb[0].mxu0 %vm40_vm1, %v27_v17  ;;  %450 = vmatprep.subr.bf16.mxu0 %v492_v2 }
   0xe   :  { %434 = vmatpush3.bf16.msra.mxu1 %v433_v18  ;;  %417 = vmatprep.mubr.msk.f32.mxu0 %vm493_vm0, %v494_v6 }
   0xf   :  { %435 = vmatprep.subr.bf16.mxu1 %v492_v2  ;;  %452 = vmatpush3.bf16.msra.mxu0 %v451_v37 }
  0x10   :  { %453 = vmatprep.subr.bf16.mxu0 %v492_v2 }
  0x12   :  { %437 = vmatpush3.bf16.msra.mxu1 %v436_v21 }
  0x13   :  { %438 = vmatprep.subr.bf16.mxu1 %v492_v2  ;;  %455 = vmatpush3.bf16.msra.mxu0 %v454_v39 }
  0x14   :  { %456 = vmatprep.subr.bf16.mxu0 %v492_v2 }
  0x16   :  { %440 = vmatpush3.bf16.msra.mxu1 %v439_v24 }
  0x17   :  { %441 = vmatprep.subr.bf16.mxu1 %v492_v2  ;;  %458 = vmatpush3.bf16.msra.mxu0 %v457_v42 }
  0x18   :  { %459 = vmatprep.subr.bf16.mxu0 %v492_v2 }
  0x1a   :  { %443 = vmatpush3.bf16.msra.mxu1 %v442_v27 }
  0x1b   :  { %444 = vmatprep.subr.bf16.mxu1 %v492_v2  ;;  %461 = vmatpush3.bf16.msra.mxu0 %v460_v50 }
  0x1e   :  { %446 = vmatpush3.bf16.msra.mxu1 %v445_v30 }
  0x1f   :  { %447 = vmatprep.subr.bf16.mxu1 %v492_v2 }
  0x22   :  { %449 = vmatpush3.bf16.msra.mxu1 %v448_v33 }
  0xe0   :  { %v110_v44 = vpop.f32.mrb[0].mxu0 }
  0xe1   :  { %v111_v45 = vadd.f32 %v316_v43, %v110_v44  ;;  %v365_v46 = vpop.f32.mrb[1].mxu0 }
  0xe3   :  { %v114_v47 = vmax.f32 %v111_v45, 0.0 }
  0xe5   :  { %399 = vmatmul.mubr.f32.vlgmr.msra.gmra.mrb[0].mxu1 %v114_v47 }
 0x1b8   :  { %v204_v52 = vpop.f32.mrb[0].mxu1 }
 0x1b9   :  { %v205_v53 = vadd.f32 %v318_v51, %v204_v52  ;;  %v400_v54 = vpop.f32.mrb[1].mxu1 }
 0x1bb   :  { %v208_v55 = vmax.f32 %v205_v53, 0.0 }
 0x1bd   :  { %418 = vmatmul.mubr.msk.f32.vlgmr.msra.gmra.mrb[2].mxu0 %vm224_vm2, %v208_v55 }
 0x290   :  { %v294_v57 = vpop.f32.mrb[2].mxu0 }
 0x291   :  { %v295_v58 = vadd.f32 %v319_v56, %v294_v57  ;;  %v419_v59 = vpop.f32.mrb[3].mxu0 }
 0x293   :  { %299 = vst.msk [vmem:[#allocation2] sm:$0xff] %vm298_vm3, %v295_v58 }
 0x294   :  { %304 = vsyncadd [#allocation3], 96  ;;  %s495_s5 = smov [#allocation2]  }
 0x295   :  { %s305_s15 = sshll.u32 %s495_s5, 4  ;;  %s306_s15 = int_to_ptr.vmem [resolvable:$true] %s305_s15 }
 0x296   :  { %s468_s4 = scalar_lea.vmem %s306_s15, 32  ;;  %s472_s16 = scalar_lea.vmem %s306_s15, 128 }
 0x297   :  { %p469_p0 = scmp.ne.s32.totalorder %s306_s15, %s468_s4  ;;  %p473_p1 = scmp.lt.s32.totalorder %s306_s15, %s306_s15 }
 0x298   :  { %p474_p2 = scmp.lt.s32.totalorder %s472_s16, %s468_s4 }
 0x29a   :  { %p475_p3 = por %p474_p2, %p473_p1 }
 0x29c   :  { %p476_p4 = pnand %p475_p3, %p469_p0 }
 0x29e   :  { %479 = shalt.err (!%p476_p4)
}
 0x29f   :  { %s480_s6 = scalar_lea.hbm %s673_s7, 32 }
 0x2a0   :  { %p481_p5 = scmp.ne.s32.totalorder %s673_s7, %s480_s6  ;;  %p484_p6 = scmp.lt.u32.totalorder %s480_s6, %s673_s7 }
 0x2a2   :  { %p486_p7 = pnand %p484_p6, %p481_p5 }
 0x2a4   :  { %489 = shalt.err (!%p486_p7)
}
 0x2a5   :  { %s496_s23 = smov 32   ;;  %s497_s24 = smov 2  }
 0x2a6   :  { %311 = dma.vmem_to_hbm [thread:$0]  %s306_s15, 32, %s673_s7, [#allocation3], %s496_s23, %s496_s23, %s497_s24  }
 0x2a7   :  { %490 = dma.done.wait [#allocation3], 128  }
 0x2a8   :  { %491 = vsyncadd [#allocation3], 4294967168 }
 0x2a9   :  { %315 = vsyncpa [#allocation3], 1 }

</bundles_post_ra>
